<compile_context>
chip_gen: v5e
topology: v5e:2x2
jax: 0.10.0
libtpu: 0.0.40
codegen_flags: <defaults>
</compile_context>

<pallas_src>
import functools

import jax
import jax.numpy as jnp
from jax import lax
from jax.experimental import pallas as pl
from jax.experimental.pallas import tpu as pltpu

# large-but-finite mask bias: exp() underflows to exactly 0, no inf arithmetic
_MASK_BIAS = -1e30


def _round_up(x, m):
    return (x + m - 1) // m * m


# --------------------------- kernel 1: q/k/v projection ---------------------------

def _qkv_proj_kernel(x_ref, w_ref, b_ref, q_ref, k_ref, v_ref, *, c8p):
    """Stacked 1x1 conv (+ folded BN + ReLU) for q, k, v on one N tile."""
    x = x_ref[0]                                                        # (C, TN)
    y = jnp.dot(w_ref[...], x, preferred_element_type=jnp.float32)      # (2*C8p+C, TN)
    y = jnp.maximum(y + b_ref[...], 0.0)
    q_ref[0] = y[:c8p].astype(q_ref.dtype)
    k_ref[0] = y[c8p:2 * c8p].astype(k_ref.dtype)
    v_ref[0] = y[2 * c8p:].astype(v_ref.dtype)


# --------------------------- kernel 2: flash attention ----------------------------

def _attn_kernel(q_ref, k_ref, v_ref, vres_ref, *rest, has_mask):
    if has_mask:
        kbias_ref = rest[0]
        rest = rest[1:]
    o_ref, m_s, l_s, acc_s = rest

    ki = pl.program_id(2)

    @pl.when(ki == 0)
    def _init():
        m_s[...] = jnp.full_like(m_s, -jnp.inf)
        l_s[...] = jnp.zeros_like(l_s)
        acc_s[...] = jnp.zeros_like(acc_s)

    q = q_ref[0]                                                        # (C8p, TQ)
    k = k_ref[0]                                                        # (C8p, TK)
    v = v_ref[0]                                                        # (C,   TK)

    # scores s[m, n] = sum_c k[c, m] * q[c, n] -> (TK, TQ): contract the channel
    # axis directly (keys on sublanes, queries on lanes, no explicit transposes).
    s = lax.dot_general(k, q, (((0,), (0,)), ((), ())),
                        preferred_element_type=jnp.float32)             # (TK, TQ)
    if has_mask:
        s = s + kbias_ref[...]          # additive (TK, 1) key-padding bias

    # online softmax over the key axis (sublanes)
    m_prev = m_s[...]                                                   # (1, TQ)
    m_new = jnp.maximum(m_prev, jnp.max(s, axis=0, keepdims=True))
    alpha = jnp.exp(m_prev - m_new)                                     # (1, TQ)
    p = jnp.exp(s - m_new)                                              # (TK, TQ)
    l_s[...] = alpha * l_s[...] + jnp.sum(p, axis=0, keepdims=True)
    m_s[...] = m_new

    pv = jnp.dot(v, p.astype(v.dtype),
                 preferred_element_type=jnp.float32)                    # (C, TQ)
    acc_s[...] = alpha * acc_s[...] + pv

    @pl.when(ki == pl.num_programs(2) - 1)
    def _finalize():
        # exact normalization (once per query tile); add residual v.
        out = acc_s[...] / l_s[...] + vres_ref[0].astype(jnp.float32)
        o_ref[0] = out.astype(o_ref.dtype)


# --------------------------------- wrapper ----------------------------------------

def shape_context_forward(x, wq, bq, wk, bk, wv, bv, *, tile=512,
                          compute_dtype=jnp.bfloat16,
                          vmem_limit_bytes=48 * 1024 * 1024):
    """ShapeContext forward.

    x: (B, C, N). wq/wk: (C//ratio, C); wv: (C, C); b*: (out, 1) with eval-mode
    BatchNorm already folded (see fold_bn_into_conv).

    compute_dtype: MXU operand dtype (bf16 recommended on v5e/v6e/v7x);
      accumulation, biases and softmax state stay f32.  None -> x.dtype.
    tile: query/key tile along N.  Sweep {512, 1024} when tuning; on v7x choose
      it so B * ceil(N/tile) >= 2 to keep both TensorCores busy.
    vmem_limit_bytes: keep <= ~48 MiB on v7x (64 MiB/core); v5e/v6e can raise
      to 64-96 MiB for larger tiles / channel counts.
    """
    B, C, N = x.shape
    C8 = wq.shape[0]
    out_dtype = x.dtype
    cd = jnp.dtype(x.dtype if compute_dtype is None else compute_dtype)

    # pad q/k channels to the sublane-packing multiple of the compute dtype
    # (zero rows give relu(0)=0 and contribute exactly 0 to the scores)
    packing = 8 * (4 // cd.itemsize)
    c8p = _round_up(C8, packing)

    # N tiling (queries == keys); pad N up to a tile multiple when needed
    if N <= tile:
        t, n_pad = N, N
    else:
        assert tile % 128 == 0, "tile must be a multiple of 128 when tiling N"
        t = tile
        n_pad = _round_up(N, tile)
    needs_mask = n_pad != N

    x_c = x.astype(cd)
    if needs_mask:
        x_c = jnp.pad(x_c, ((0, 0), (0, 0), (0, n_pad - N)))

    def pad_rows(a, rows):
        return jnp.pad(a, ((0, rows - a.shape[0]), (0, 0)))

    wqkv = jnp.concatenate([pad_rows(wq, c8p), pad_rows(wk, c8p), wv],
                           axis=0).astype(cd)                           # (2*C8p+C, C)
    bqkv = jnp.concatenate([pad_rows(bq, c8p), pad_rows(bk, c8p), bv],
                           axis=0).astype(jnp.float32)                  # (2*C8p+C, 1)
    c_tot = 2 * c8p + C

    # ---- pass 1: q/k/v projection, computed exactly once per batch element ----
    q, k, v = pl.pallas_call(
        functools.partial(_qkv_proj_kernel, c8p=c8p),
        out_shape=(jax.ShapeDtypeStruct((B, c8p, n_pad), cd),
                   jax.ShapeDtypeStruct((B, c8p, n_pad), cd),
                   jax.ShapeDtypeStruct((B, C, n_pad), cd)),
        grid_spec=pltpu.PrefetchScalarGridSpec(
            num_scalar_prefetch=0,
            grid=(B, n_pad // t),
            in_specs=[
                pl.BlockSpec((1, C, t), lambda bi, ni: (bi, 0, ni)),    # x tile
                pl.BlockSpec((c_tot, C), lambda bi, ni: (0, 0)),        # stacked weights
                pl.BlockSpec((c_tot, 1), lambda bi, ni: (0, 0)),        # stacked biases
            ],
            out_specs=[
                pl.BlockSpec((1, c8p, t), lambda bi, ni: (bi, 0, ni)),  # q
                pl.BlockSpec((1, c8p, t), lambda bi, ni: (bi, 0, ni)),  # k
                pl.BlockSpec((1, C, t), lambda bi, ni: (bi, 0, ni)),    # v
            ],
        ),
        compiler_params=pltpu.CompilerParams(
            dimension_semantics=("parallel", "parallel"),
            vmem_limit_bytes=vmem_limit_bytes),
    )(x_c, wqkv, bqkv)

    # ---- pass 2: flash attention over key tiles + residual ----
    in_specs = [
        pl.BlockSpec((1, c8p, t), lambda bi, qi, ki: (bi, 0, qi)),      # q (query tile)
        pl.BlockSpec((1, c8p, t), lambda bi, qi, ki: (bi, 0, ki)),      # k (key tile)
        pl.BlockSpec((1, C, t), lambda bi, qi, ki: (bi, 0, ki)),        # v (key tile)
        pl.BlockSpec((1, C, t), lambda bi, qi, ki: (bi, 0, qi)),        # v (residual)
    ]
    args = [q, k, v, v]
    if needs_mask:
        kbias = jnp.where(jnp.arange(n_pad) < N, 0.0, _MASK_BIAS)
        kbias = kbias.astype(jnp.float32)[:, None]                      # (n_pad, 1)
        in_specs.append(pl.BlockSpec((t, 1), lambda bi, qi, ki: (ki, 0)))
        args.append(kbias)

    out = pl.pallas_call(
        functools.partial(_attn_kernel, has_mask=needs_mask),
        out_shape=jax.ShapeDtypeStruct((B, C, n_pad), out_dtype),
        grid_spec=pltpu.PrefetchScalarGridSpec(
            num_scalar_prefetch=0,
            grid=(B, n_pad // t, n_pad // t),
            in_specs=in_specs,
            out_specs=pl.BlockSpec((1, C, t), lambda bi, qi, ki: (bi, 0, qi)),
            scratch_shapes=[
                pltpu.VMEM((1, t), jnp.float32),    # m (running max)
                pltpu.VMEM((1, t), jnp.float32),    # l (running denominator)
                pltpu.VMEM((C, t), jnp.float32),    # acc (unnormalized output)
            ],
        ),
        compiler_params=pltpu.CompilerParams(
            dimension_semantics=("parallel", "parallel", "arbitrary"),
            vmem_limit_bytes=vmem_limit_bytes),
    )(*args)

    return out if n_pad == N else out[..., :N]


# ----------------------------- reference & helpers --------------------------------

def fold_bn_into_conv(w, gamma, beta, mean, var, eps=1e-5):
    """Conv1d(bias=False) + eval-mode BatchNorm1d -> effective (weight, bias)."""
    scale = gamma / jnp.sqrt(var + eps)
    w_eff = (w * scale[:, None]).astype(jnp.float32)                    # (O, C)
    b_eff = (beta - scale * mean)[:, None].astype(jnp.float32)          # (O, 1)
    return w_eff, b_eff


def shape_context_reference(x, wq, bq, wk, bk, wv, bv, compute_dtype=None):
    """Pure-JAX reference.  With compute_dtype set it mirrors the kernel's cast
    points (bf16 MXU operands, f32 accumulation), giving a tight comparison."""
    cd = jnp.dtype(x.dtype if compute_dtype is None else compute_dtype)
    xc = x.astype(cd)

    def proj(w, b):
        y = jnp.einsum("oc,bcn->bon", w.astype(cd), xc,
                       preferred_element_type=jnp.float32) + b[None].astype(jnp.float32)
        return jnp.maximum(y, 0.0).astype(cd)

    q = proj(wq, bq)                                                    # (B, C8, N)
    k = proj(wk, bk)                                                    # (B, C8, N)
    v = proj(wv, bv)                                                    # (B, C,  N)
    s = jnp.einsum("bcn,bcm->bnm", q, k,
                   preferred_element_type=jnp.float32)                  # (B, N, N)
    a = jax.nn.softmax(s, axis=-1)
    out = jnp.einsum("bcm,bnm->bcn", v, a.astype(cd),
                     preferred_element_type=jnp.float32)                # (B, C, N)
    return out + v.astype(jnp.float32)


def make_folded_params(key, C, ratio=8):
    C8 = C // ratio
    keys = jax.random.split(key, 15)

    def make_one(kw, kg, kb, km, kv_, out_dim):
        w = jax.random.normal(kw, (out_dim, C), dtype=jnp.float32) * 0.1
        gamma = jax.random.uniform(kg, (out_dim,), minval=0.5, maxval=1.5)
        beta = jax.random.normal(kb, (out_dim,), dtype=jnp.float32) * 0.1
        mean = jax.random.normal(km, (out_dim,), dtype=jnp.float32) * 0.1
        var = jax.random.uniform(kv_, (out_dim,), minval=0.5, maxval=1.5)
        return fold_bn_into_conv(w, gamma, beta, mean, var)

    p1 = make_one(*keys[0:5], C8)    # conv1 + bn1  (q)
    p2 = make_one(*keys[5:10], C8)   # conv2 + bn2  (k)
    p3 = make_one(*keys[10:15], C)   # conv3 + bn3  (v)
    return p1, p2, p3


if __name__ == "__main__":
    def run_case(key, B, C, N, tile, compute_dtype, atol, rtol):
        kx, kp = jax.random.split(key)
        x = jax.random.normal(kx, (B, C, N), dtype=jnp.float32)
        (wq, bq), (wk, bk), (wv, bv) = make_folded_params(kp, C)

        out = shape_context_forward(x, wq, bq, wk, bk, wv, bv,
                                    tile=tile, compute_dtype=compute_dtype)
        out = jax.block_until_ready(out)
        assert out.shape == (B, C, N)
        assert bool(jnp.all(jnp.isfinite(out)))

        ref = shape_context_reference(x, wq, bq, wk, bk, wv, bv,
                                      compute_dtype=compute_dtype)
        err = jnp.max(jnp.abs(out - ref))
        assert jnp.allclose(out, ref, atol=atol, rtol=rtol), f"mismatch, max|err|={err}"

    key = jax.random.PRNGKey(0)
    k1, k2, k3 = jax.random.split(key, 3)

    # single-tile path, bf16 MXU operands (recommended production path)
    run_case(k1, B=2, C=64, N=40, tile=512,
             compute_dtype=jnp.bfloat16, atol=2e-2, rtol=2e-2)
    # multi-tile path: query/key tiling, online softmax across key tiles,
    # padding + additive key mask
    run_case(k2, B=2, C=64, N=200, tile=128,
             compute_dtype=jnp.bfloat16, atol=2e-2, rtol=2e-2)
    # f32-compute smoke test (looser tolerance: f32 MXU precision is backend-dependent)
    run_case(k3, B=2, C=64, N=200, tile=128,
             compute_dtype=jnp.float32, atol=5e-2, rtol=5e-2)

    print("KERNEL_OK")
</pallas_src>

<mosaic_0001>
module attributes {stable_mosaic.version = 11 : i64} {
  func.func @_qkv_proj_kernel(%arg0: i32, %arg1: i32, %arg2: memref<1x64x40xbf16, #tpu.memory_space<vmem>>, %arg3: memref<96x64xbf16, #tpu.memory_space<vmem>>, %arg4: memref<96x1xf32, #tpu.memory_space<vmem>>, %arg5: memref<1x16x40xbf16, #tpu.memory_space<vmem>>, %arg6: memref<1x16x40xbf16, #tpu.memory_space<vmem>>, %arg7: memref<1x64x40xbf16, #tpu.memory_space<vmem>>) attributes {dimension_semantics = [#tpu.dimension_semantics<parallel>, #tpu.dimension_semantics<parallel>], iteration_bounds = array<i64: 2, 1>, scalar_prefetch = 0 : i64, scratch_operands = 0 : i64, tpu.core_type = #tpu.core_type<tc>, window_params = [{transform_indices = @transform_0, window_bounds = array<i64: 1, 64, 40>}, {pipeline_mode = #tpu.pipeline_mode<synchronous>, transform_indices = @transform_1, window_bounds = array<i64: 96, 64>}, {pipeline_mode = #tpu.pipeline_mode<synchronous>, transform_indices = @transform_2, window_bounds = array<i64: 96, 1>}, {transform_indices = @transform_3, window_bounds = array<i64: 1, 16, 40>}, {transform_indices = @transform_4, window_bounds = array<i64: 1, 16, 40>}, {transform_indices = @transform_5, window_bounds = array<i64: 1, 64, 40>}]} {
    %c0 = arith.constant 0 : index
    %c0_0 = arith.constant 0 : index
    %c0_1 = arith.constant 0 : index
    %0 = vector.load %arg2[%c0, %c0_0, %c0_1] : memref<1x64x40xbf16, #tpu.memory_space<vmem>>, vector<1x64x40xbf16>
    %1 = vector.shape_cast %0 : vector<1x64x40xbf16> to vector<64x40xbf16>
    %c0_2 = arith.constant 0 : index
    %c0_3 = arith.constant 0 : index
    %2 = vector.load %arg3[%c0_2, %c0_3] : memref<96x64xbf16, #tpu.memory_space<vmem>>, vector<96x64xbf16>
    %cst = arith.constant dense<0.000000e+00> : vector<96x40xf32>
    %3 = tpu.matmul %2, %1, %cst {dimension_numbers = #tpu.dot_dimension_numbers<[1], [0], [0], [1], [0, 0, 1, 1], [], []>} : vector<96x64xbf16>, vector<64x40xbf16>, vector<96x40xf32> -> vector<96x40xf32>
    %c0_4 = arith.constant 0 : index
    %c0_5 = arith.constant 0 : index
    %4 = vector.load %arg4[%c0_4, %c0_5] : memref<96x1xf32, #tpu.memory_space<vmem>>, vector<96x1xf32>
    %5 = vector.broadcast %4 : vector<96x1xf32> to vector<96x40xf32>
    %6 = arith.addf %3, %5 : vector<96x40xf32>
    %cst_6 = arith.constant 0.000000e+00 : f32
    %7 = vector.broadcast %cst_6 : f32 to vector<96x40xf32>
    %8 = arith.maximumf %6, %7 : vector<96x40xf32>
    %9 = vector.extract_strided_slice %8 {offsets = [0, 0], sizes = [16, 40], strides = [1, 1]} : vector<96x40xf32> to vector<16x40xf32>
    %10 = arith.truncf %9 : vector<16x40xf32> to vector<16x40xbf16>
    %c0_7 = arith.constant 0 : index
    %c0_8 = arith.constant 0 : index
    %c0_9 = arith.constant 0 : index
    %11 = vector.load %arg5[%c0_7, %c0_8, %c0_9] : memref<1x16x40xbf16, #tpu.memory_space<vmem>>, vector<1x16x40xbf16>
    %12 = vector.shape_cast %11 : vector<1x16x40xbf16> to vector<16x40xbf16>
    %13 = vector.shape_cast %10 : vector<16x40xbf16> to vector<1x16x40xbf16>
    tpu.vector_store %arg5[%c0_7, %c0_8, %c0_9], %13 {strides = array<i32>} : memref<1x16x40xbf16, #tpu.memory_space<vmem>>, vector<1x16x40xbf16>,
    %14 = vector.extract_strided_slice %8 {offsets = [16, 0], sizes = [16, 40], strides = [1, 1]} : vector<96x40xf32> to vector<16x40xf32>
    %15 = arith.truncf %14 : vector<16x40xf32> to vector<16x40xbf16>
    %c0_10 = arith.constant 0 : index
    %c0_11 = arith.constant 0 : index
    %c0_12 = arith.constant 0 : index
    %16 = vector.load %arg6[%c0_10, %c0_11, %c0_12] : memref<1x16x40xbf16, #tpu.memory_space<vmem>>, vector<1x16x40xbf16>
    %17 = vector.shape_cast %16 : vector<1x16x40xbf16> to vector<16x40xbf16>
    %18 = vector.shape_cast %15 : vector<16x40xbf16> to vector<1x16x40xbf16>
    tpu.vector_store %arg6[%c0_10, %c0_11, %c0_12], %18 {strides = array<i32>} : memref<1x16x40xbf16, #tpu.memory_space<vmem>>, vector<1x16x40xbf16>,
    %19 = vector.extract_strided_slice %8 {offsets = [32, 0], sizes = [64, 40], strides = [1, 1]} : vector<96x40xf32> to vector<64x40xf32>
    %20 = arith.truncf %19 : vector<64x40xf32> to vector<64x40xbf16>
    %c0_13 = arith.constant 0 : index
    %c0_14 = arith.constant 0 : index
    %c0_15 = arith.constant 0 : index
    %21 = vector.load %arg7[%c0_13, %c0_14, %c0_15] : memref<1x64x40xbf16, #tpu.memory_space<vmem>>, vector<1x64x40xbf16>
    %22 = vector.shape_cast %21 : vector<1x64x40xbf16> to vector<64x40xbf16>
    %23 = vector.shape_cast %20 : vector<64x40xbf16> to vector<1x64x40xbf16>
    tpu.vector_store %arg7[%c0_13, %c0_14, %c0_15], %23 {strides = array<i32>} : memref<1x64x40xbf16, #tpu.memory_space<vmem>>, vector<1x64x40xbf16>,
    return
  }
  func.func @transform_0(%arg0: i32, %arg1: i32) -> (i32, i32, i32) {
    %c0_i32 = arith.constant 0 : i32
    %c0_i32_0 = arith.constant 0 : i32
    return %arg0, %c0_i32, %arg1 : i32, i32, i32
  }
  func.func @transform_1(%arg0: i32, %arg1: i32) -> (i32, i32) {
    %c0_i32 = arith.constant 0 : i32
    %c0_i32_0 = arith.constant 0 : i32
    %c0_i32_1 = arith.constant 0 : i32
    return %c0_i32, %c0_i32_0 : i32, i32
  }
  func.func @transform_2(%arg0: i32, %arg1: i32) -> (i32, i32) {
    %c0_i32 = arith.constant 0 : i32
    %c0_i32_0 = arith.constant 0 : i32
    %c0_i32_1 = arith.constant 0 : i32
    return %c0_i32, %c0_i32_0 : i32, i32
  }
  func.func @transform_3(%arg0: i32, %arg1: i32) -> (i32, i32, i32) {
    %c0_i32 = arith.constant 0 : i32
    %c0_i32_0 = arith.constant 0 : i32
    return %arg0, %c0_i32, %arg1 : i32, i32, i32
  }
  func.func @transform_4(%arg0: i32, %arg1: i32) -> (i32, i32, i32) {
    %c0_i32 = arith.constant 0 : i32
    %c0_i32_0 = arith.constant 0 : i32
    return %arg0, %c0_i32, %arg1 : i32, i32, i32
  }
  func.func @transform_5(%arg0: i32, %arg1: i32) -> (i32, i32, i32) {
    %c0_i32 = arith.constant 0 : i32
    %c0_i32_0 = arith.constant 0 : i32
    return %arg0, %c0_i32, %arg1 : i32, i32, i32
  }
}

</mosaic_0001>

<bundles_post_ra>
// kernel: tpu_custom_call.1
= control target key start
LH: loop header
LB: loop body
LE: loop exit
PB: predicated region body
PF: predicated region fallthrough
CT: control target
= control target key end

     0   :  { %s1259_s0 = inlined_call_operand.vmem [shape: bf16[2,64,40], index: 0, kind: input, shape index: {}]   ;;  %s1260_s1 = inlined_call_operand.vmem [shape: bf16[96,64], index: 1, kind: input, shape index: {}]   ;;  %s1261_s2 = inlined_call_operand.vmem [shape: f32[96,1], index: 2, kind: input, shape index: {}]   ;;  %s1262_s3 = inlined_call_operand.hbm [shape: bf16[2,16,40], index: 3, kind: output, shape index: {0}]   ;;  %s1263_s4 = inlined_call_operand.hbm [shape: bf16[2,16,40], index: 4, kind: output, shape index: {1}]   ;;  %s1264_s5 = inlined_call_operand.vmem [shape: bf16[2,64,40], index: 5, kind: output, shape index: {2}]  }
   0x1   :  { %1265 = sst [smem:[#allocation8_spill]] %s1259_s0 }
   0x2   :  { %11 = vsyncpa [#allocation3], 0 }
   0x3   :  { %13 = vsyncpa [#allocation3 + $0x1], 0 }
   0x4   :  { %14 = vsyncpa [#allocation5], 0 }
   0x5   :  { %16 = vsyncpa [#allocation5 + $0x1], 0  ;;  %s1025_s18 = smov 0   ;;  %s1027_s19 = smov 0  }
   0x6   :  { %s1029_s20 = smov 0   ;;  %s1031_s21 = smov 0  }
   0x7   :  { %s1033_s22 = smov 0   ;;  %s1035_s23 = smov 0  }
   0x8 LB: > { %s723_s24 = sadd.s32 4294967295, %s990_s23   ;;  %s724_s25 = sadd.s32 4294967294, %s990_s23   ;;  %s990_s23 = sphi %s1035_s23, %s22_s23   ;;  %s986_s22 = sphi %s1033_s22, %s1273_s22   ;;  %s982_s21 = sphi %s1031_s21, %s1272_s21   ;;  %s978_s20 = sphi %s1029_s20, %s1271_s20   ;;  %s974_s19 = sphi %s1027_s19, %s1270_s19   ;;  %s970_s18 = sphi %s1025_s18, %s1269_s18  }
   0x9   : > { %s34_s26 = sadd.s32 1, %s986_s22  ;;  %s113_s27 = sadd.s32 1, %s978_s20 }
   0xa   : > { %p36_p0 = scmp.ge.s32.totalorder %s34_s26, 2  ;;  %p123_p1 = scmp.ne.s32.totalorder %s978_s20, %s974_s19 }
   0xb   : > { %p124_p2 = scmp.eq.s32.totalorder %s723_s24, 1  ;;  %p129_p3 = scmp.ne.s32.totalorder %s974_s19, %s970_s18 }
   0xc   : > { %s1275_s26 = smov (%p36_p0, %s34_s26), 0  ;;  %p130_p5 = scmp.eq.s32.totalorder %s724_s25, 1 }
   0xd   : > { %p1065_p4 = por %p124_p2, %p123_p1  ;;  %s108_s29 = ssub.s32 %s986_s22, %s1275_s26 }
   0xe   : > { %p727_p6 = scmp.ge.s32.totalorder %s990_s23, 1  ;;  %p111_p7 = scmp.eq.s32.totalorder %s108_s29, 0 }
   0xf   : > { %p1072_p8 = por %p130_p5, %p129_p3  ;;  %p221_p9 = scmp.lt.s32.totalorder %s990_s23, 3 }
  0x10   : > { %s1078_s6 = scalar_select %p111_p7, %s978_s20, %s113_s27  }
  0x11   : > { %p222_p10 = pnand %p727_p6, %p221_p9 }
  0x12   : > { %p265_p11 = scmp.lt.s32.totalorder (!%p222_p10), %s982_s21, 1  ;;  %s1268_s0 = sld [smem:[#allocation8_spill]] (!%p222_p10) }
  0x13   : > { %225 = sbr.rel (%p222_p10) target bundleno = 219 (0xdb), region = 32  ;;  %s1153_s7 = sand.u32 (!%p222_p10), 1, %s974_s19  }
  0x14   : > { %s728_s8 = sshll.u32 (!%p222_p10), %s1153_s7, 3  ;;  %s800_s9 = sshll.u32 (!%p222_p10), %s982_s21, 3 }
  0x15   : > { %s1157_s10 = scalar_lea.vmem (!%p222_p10), [#allocation2], %s728_s8  ;;  %s1161_s13 = scalar_lea.vmem (!%p222_p10), [#allocation4], %s728_s8 }
  0x16   : > { %s549_s16 = scalar_lea.hbm (!%p222_p10), %s1262_s3, %s800_s9  ;;  %s550_s17 = sshll.u32 (!%p222_p10), %s1157_s10, 4  ;;  %s1180_s17 = int_to_ptr.vmem [resolvable:$true] %s550_s17 }
  0x17   : > { %s568_s24 = sshll.u32 (!%p222_p10), %s1161_s13, 4  ;;  %s567_s27 = scalar_lea.hbm (!%p222_p10), %s1263_s4, %s800_s9  ;;  %s1182_s24 = int_to_ptr.vmem [resolvable:$true] %s568_s24 }
  0x18   : > { %v304_v0 = vld [vmem:[%s1261_s2 + $0x10] sm:$0xff]  ;;  %v302_v1 = vld [vmem:[%s1261_s2] sm:$0xff]  ;;  %v992_v2 = vmov 0   ;;  %s1088_s11 = scalar_select %p265_p11, %s982_s21, 1  ;;  %v305_v4 = vld [vmem:[%s1261_s2 + $0x18] sm:$0xff]  ;;  %vm428_vm0 = vcmask 523264  }
  0x19   : > { %878 = vset.pattern.permute.xlu1 %v992_v2  ;;  %877 = vset.pattern.permute.xlu0 %v992_v2  ;;  %v303_v5 = vld [vmem:[%s1261_s2 + $0x8] sm:$0xff]  ;;  %v306_v7 = vld [vmem:[%s1261_s2 + $0x20] sm:$0xff]  ;;  %v309_v9 = vld [vmem:[%s1261_s2 + $0x38] sm:$0xff]  ;;  %vm500_vm1 = vcmask 322560   ;;  %s552_s21 = sshll.u32 %s549_s16, 4  ;;  %s900_s25 = scalar_lea.hbm %s1262_s3, 16  ;;  %s1186_s21 = int_to_ptr.hbm [resolvable:$true] %s552_s21 }
  0x1a   : > { %326 = vperm.xlu1 %878, %v304_v0   ;;  %316 = vperm.xlu0 %877, %v302_v1   ;;  %s788_s12 = sshll.u32 %s1088_s11, 5  ;;  %v308_v10 = vld [vmem:[%s1261_s2 + $0x30] sm:$0xff]  ;;  %v307_v12 = vld [vmem:[%s1261_s2 + $0x28] sm:$0xff]  ;;  %v794_v13 = vld [vmem:[%s1260_s1] sm:$0xff]  ;;  %s570_s11 = sshll.u32 %s567_s27, 4  ;;  %s1192_s11 = int_to_ptr.hbm [resolvable:$true] %s570_s11 }
  0x1b   : > { %879 = vset.pattern.permute.xlu2 %v992_v2  ;;  %s272_s15 = scalar_lea.vmem %s1268_s0, %s788_s12  ;;  %v795_v14 = vld [vmem:[%s1260_s1 + $0x8] sm:$0xff]  ;;  %v797_v15 = vld [vmem:[%s1260_s1 + $0x18] sm:$0xff]  ;;  %v798_v16 = vld [vmem:[%s1260_s1 + $0x20] sm:$0xff]  ;;  %s1178_s0 = scalar_lea.vmem %s1264_s5, %s788_s12 }
  0x1c   : > { %v793_v3 = vld [vmem:[%s272_s15 + $0x18] sm:$0xff]  ;;  %v792_v6 = vld [vmem:[%s272_s15 + $0x10] sm:$0xff]  ;;  %336 = vperm.xlu2 %879, %v306_v7   ;;  %v791_v8 = vld [vmem:[%s272_s15 + $0x8] sm:$0xff]  ;;  %s524_s12 = scalar_lea.sflag [#allocation3], %s1153_s7  ;;  %s894_s9 = sshra.s32 %s1186_s21, 4  ;;  %s895_s9 = int_to_ptr.hbm [resolvable:$true] %s894_s9 }
  0x1d   : > { %451 = vmatpush.bf16.msra.mxu0 %v793_v3  ;;  %802 = vmatpush.bf16.msra.mxu1 %v793_v3  ;;  %v790_v11 = vld [vmem:[%s272_s15] sm:$0xff]  ;;  %v312_v17 = vld [vmem:[%s1261_s2 + $0x50] sm:$0xff]  ;;  %v311_v18 = vld [vmem:[%s1261_s2 + $0x48] sm:$0xff]  ;;  %s896_s14 = scalar_lea.hbm %s895_s9, 8  ;;  %p901_p1 = scmp.lt.s32.totalorder %s895_s9, %s1262_s3 }
  0x1e   : > { %803 = vmatpush.bf16.msra.mxu2 %v793_v3  ;;  %804 = vmatpush.bf16.msra.mxu3 %v793_v3  ;;  %v310_v19 = vld [vmem:[%s1261_s2 + $0x40] sm:$0xff]  ;;  %v313_v20 = vld [vmem:[%s1261_s2 + $0x58] sm:$0xff]  ;;  %v796_v21 = vld [vmem:[%s1260_s1 + $0x10] sm:$0xff]  ;;  %p897_p12 = scmp.ne.s32.totalorder %s895_s9, %s896_s14  ;;  %p902_p2 = scmp.lt.s32.totalorder %s900_s25, %s896_s14 }
  0x1f   : > { %v799_v22 = vld [vmem:[%s1260_s1 + $0x28] sm:$0xff] }
  0x20   : > { %p898_p13 = pnand %p897_p12, %p1065_p4  ;;  %p903_p3 = por %p902_p2, %p901_p1 }
  0x21   : > { %452 = vmatpush.bf16.msra.mxu0 %v792_v6  ;;  %805 = vmatpush.bf16.msra.mxu1 %v792_v6 }
  0x22   : > { %331 = vperm.xlu1 %878, %v305_v4   ;;  %321 = vperm.xlu0 %877, %v303_v5   ;;  %p899_p0 = pneg %p898_p13 }
  0x23   : > { %806 = vmatpush.bf16.msra.mxu2 %v792_v6  ;;  %807 = vmatpush.bf16.msra.mxu3 %v792_v6 }
  0x24   : > { %341 = vperm.xlu2 %879, %v307_v12   ;;  %p904_p5 = pnand %p903_p3, %p899_p0 }
  0x25   : > { %453 = vmatpush.bf16.msra.mxu0 %v791_v8  ;;  %808 = vmatpush.bf16.msra.mxu1 %v791_v8 }
  0x27   : > { %809 = vmatpush.bf16.msra.mxu2 %v791_v8  ;;  %810 = vmatpush.bf16.msra.mxu3 %v791_v8 }
  0x29   : > { %454 = vmatpush.bf16.msra.mxu0 %v790_v11  ;;  %811 = vmatpush.bf16.msra.mxu1 %v790_v11 }
  0x2a   : > { %351 = vperm.xlu1 %878, %v309_v9   ;;  %346 = vperm.xlu0 %877, %v308_v10  }
  0x2b   : > { %812 = vmatpush.bf16.msra.mxu2 %v790_v11  ;;  %813 = vmatpush.bf16.msra.mxu3 %v790_v11 }
  0x2c   : > { %774 = vmatmul.msk.bf16.vlgmr.msra.gmra.mxu0 %vm428_vm0, %v794_v13  ;;  %775 = vmatmul.msk.bf16.vlgmr.msra.gmra.mxu1 %vm428_vm0, %v795_v14 }
  0x2d   : > { %356 = vperm.xlu2 %879, %v310_v19  }
  0x2e   : > { %777 = vmatmul.msk.bf16.vlgmr.msra.gmra.mxu2 %vm428_vm0, %v797_v15  ;;  %778 = vmatmul.msk.bf16.vlgmr.msra.gmra.mxu3 %vm428_vm0, %v798_v16 }
  0x32   : > { %366 = vperm.xlu1 %878, %v312_v17   ;;  %361 = vperm.xlu0 %877, %v311_v18  }
  0x35   : > { %371 = vperm.xlu2 %879, %v313_v20  }
  0x3c   : > { %776 = vmatmul.msk.bf16.gmra.mxu1 %vm428_vm0, %v796_v21 }
  0x3e   : > { %779 = vmatmul.msk.bf16.gmra.mxu3 %vm428_vm0, %v799_v22 }
  0x76   : > { %v337_v24 = vpop.permute.xlu2 %336 }
  0x7e   : > { %v1150_v27 = vpop.permute.xlu2 %341 }
  0x87   : > { %v357_v38 = vpop.permute.xlu2 %356 }
  0x8c   : > { %v317_v23 = vpop.permute.xlu0 %316  ;;  %v327_v25 = vpop.permute.xlu1 %326 }
  0x94   : > { %v322_v26 = vpop.permute.xlu0 %321  ;;  %v332_v32 = vpop.permute.xlu1 %331 }
  0x9c   : > { %v347_v35 = vpop.permute.xlu0 %346  ;;  %v352_v53 = vpop.permute.xlu1 %351 }
  0xa4   : > { %v362_v56 = vpop.permute.xlu0 %361 }
  0xa9   : > { %v456_v28 = vpop.f32.mrf.mxu0  ;;  %v461_v29 = vpop.f32.mrf.mxu1 }
  0xaa   : > { %v457_v30 = vadd.f32 %v456_v28, %v317_v23  ;;  %v462_v31 = vadd.f32 %v461_v29, %v327_v25 }
  0xac   : > { %v486_v33 = vmax.f32 %v457_v30, 0.0  ;;  %v488_v34 = vmax.f32 %v462_v31, 0.0 }
  0xae   : > { %v498_v36 = vpack.c.bf16 %v486_v33, %v486_v33  ;;  %v503_v37 = vpack.c.bf16 %v488_v34, %v488_v34 }
  0xb0   : > { %501 = vst.msk [vmem:[%s1157_s10] sm:$0xf] %vm500_vm1, %v498_v36 }
  0xb1   : > { %v471_v39 = vpop.f32.mrf.mxu2  ;;  %v476_v40 = vpop.f32.mrf.mxu3  ;;  %505 = vst.msk [vmem:[%s1161_s13] sm:$0xf] %vm500_vm1, %v503_v37 }
  0xb2   : > { %v472_v41 = vadd.f32 %v471_v39, %v347_v35  ;;  %v477_v42 = vadd.f32 %v476_v40, %v357_v38  ;;  %v458_v43 = vpop.f32.mrf.mxu0  ;;  %v463_v44 = vpop.f32.mrf.mxu1 }
  0xb3   : > { %v459_v45 = vadd.f32 %v458_v43, %v322_v26  ;;  %v464_v46 = vadd.f32 %v463_v44, %v332_v32 }
  0xb4   : > { %v492_v47 = vmax.f32 %v472_v41, 0.0  ;;  %v494_v48 = vmax.f32 %v477_v42, 0.0 }
  0xb5   : > { %v487_v49 = vmax.f32 %v459_v45, 0.0  ;;  %v489_v50 = vmax.f32 %v464_v46, 0.0 }
  0xb6   : > { %v509_v51 = vpack.c.bf16 %v492_v47, %v492_v47  ;;  %v511_v52 = vpack.c.bf16 %v494_v48, %v494_v48 }
  0xb7   : > { %v499_v54 = vpack.c.bf16 %v487_v49, %v487_v49  ;;  %v504_v55 = vpack.c.bf16 %v489_v50, %v489_v50 }
  0xb8   : > { %517 = vst.msk [vmem:[%s1178_s0 + $0x8] sm:$0xf] %vm500_vm1, %v509_v51 }
  0xb9   : > { %519 = vst.msk [vmem:[%s1178_s0 + $0x10] sm:$0xf] %vm500_vm1, %v511_v52  ;;  %v473_v57 = vpop.f32.mrf.mxu2  ;;  %v478_v58 = vpop.f32.mrf.mxu3 }
  0xba   : > { %502 = vst.msk [vmem:[%s1157_s10 + $0x4] sm:$0xf] %vm500_vm1, %v499_v54  ;;  %v474_v59 = vadd.f32 %v473_v57, %v352_v53  ;;  %v479_v60 = vadd.f32 %v478_v58, %v362_v56  ;;  %v466_v61 = vpop.f32.mrf.mxu1 }
  0xbb   : > { %506 = vst.msk [vmem:[%s1161_s13 + $0x4] sm:$0xf] %vm500_vm1, %v504_v55  ;;  %v467_v62 = vadd.f32 %v466_v61, %v337_v24 }
  0xbc   : > { %v493_v63 = vmax.f32 %v474_v59, 0.0  ;;  %v495_v0 = vmax.f32 %v479_v60, 0.0 }
  0xbd   : > { %907 = shalt.err (!%p904_p5)
}
  0xbe   : > { %s993_s13 = smov 64   ;;  %s994_s29 = smov 4   ;;  %v490_v1 = vmax.f32 %v467_v62, 0.0 }
  0xbf   : > { %814 = dma.vmem_to_hbm [thread:$0]  (%p1065_p4), %s1180_s17, 128, %s1186_s21, %s524_s12, %s993_s13, %s993_s13, %s994_s29  }
  0xc0   : > { %s529_s8 = scalar_lea.sflag [#allocation5], %s1153_s7  ;;  %s922_s16 = sshra.s32 %s1192_s11, 4  ;;  %s923_s16 = int_to_ptr.hbm [resolvable:$true] %s922_s16 }
  0xc1   : > { %s924_s10 = scalar_lea.hbm %s923_s16, 8  ;;  %s928_s25 = scalar_lea.hbm %s1263_s4, 16 }
  0xc2   : > { %p925_p6 = scmp.ne.s32.totalorder %s923_s16, %s924_s10  ;;  %p929_p10 = scmp.lt.s32.totalorder %s923_s16, %s1263_s4 }
  0xc3   : > { %p930_p11 = scmp.lt.s32.totalorder %s928_s25, %s924_s10 }
  0xc4   : > { %p926_p7 = pnand %p925_p6, %p1065_p4 }
  0xc5   : > { %p931_p12 = por %p930_p11, %p929_p10 }
  0xc6   : > { %p927_p9 = pneg %p926_p7 }
  0xc8   : > { %p932_p13 = pnand %p931_p12, %p927_p9 }
  0xca   : > { %935 = shalt.err (!%p932_p13)
}
  0xcb   : > { %815 = dma.vmem_to_hbm [thread:$0]  (%p1065_p4), %s1182_s24, 128, %s1192_s11, %s529_s8, %s993_s13, %s993_s13, %s994_s29   ;;  %v510_v2 = vpack.c.bf16 %v493_v63, %v493_v63  ;;  %v512_v3 = vpack.c.bf16 %v495_v0, %v495_v0  ;;  %v507_v4 = vpack.c.bf16 %v490_v1, %v490_v1  ;;  %v367_v5 = vpop.permute.xlu1 %366  ;;  %v481_v6 = vpop.f32.mrf.mxu3 }
  0xcc   : > { %v482_v7 = vadd.f32 %v481_v6, %v367_v5  ;;  %v468_v8 = vpop.f32.mrf.mxu1  ;;  %v372_v14 = vpop.permute.xlu2 %371 }
  0xcd   : > { %518 = vst.msk [vmem:[%s1178_s0 + $0xc] sm:$0xf] %vm500_vm1, %v510_v2  ;;  %v469_v9 = vadd.f32 %v468_v8, %v1150_v27 }
  0xce   : > { %520 = vst.msk [vmem:[%s1178_s0 + $0x14] sm:$0xf] %vm500_vm1, %v512_v3  ;;  %v496_v10 = vmax.f32 %v482_v7, 0.0 }
  0xcf   : > { %515 = vst.msk [vmem:[%s1178_s0] sm:$0xf] %vm500_vm1, %v507_v4  ;;  %v491_v11 = vmax.f32 %v469_v9, 0.0 }
  0xd0   : > { %v513_v12 = vpack.c.bf16 %v496_v10, %v496_v10 }
  0xd1   : > { %v508_v13 = vpack.c.bf16 %v491_v11, %v491_v11 }
  0xd2   : > { %521 = vst.msk [vmem:[%s1178_s0 + $0x18] sm:$0xf] %vm500_vm1, %v513_v12 }
  0xd3   : > { %516 = vst.msk [vmem:[%s1178_s0 + $0x4] sm:$0xf] %vm500_vm1, %v508_v13  ;;  %v483_v15 = vpop.f32.mrf.mxu3 }
  0xd4   : > { %v484_v16 = vadd.f32 %v483_v15, %v372_v14 }
  0xd6   : > { %v497_v17 = vmax.f32 %v484_v16, 0.0 }
  0xd8   : > { %v514_v18 = vpack.c.bf16 %v497_v17, %v497_v17 }
  0xda   : > { %522 = vst.msk [vmem:[%s1178_s0 + $0x1c] sm:$0xf] %vm500_vm1, %v514_v18 }
  0xdb PF: > { %p825_p4 = scmp.ge.s32.totalorder %s990_s23, 2  ;;  %s588_s28 = sand.u32 1, %s970_s18  }
  0xdc   : > { %s589_s7 = scalar_lea.sflag [#allocation3], %s588_s28 }
  0xdd   : > { %p819_p0 = pnand %p825_p4, %p1072_p8 }
  0xdf   : > { %p820_p1 = pneg %p819_p0 }
  0xe1   : > { %961 = dma.done.wait (%p820_p1), %s589_s7, 128  }
  0xe2   : > { %963 = vsyncadd (%p820_p1), %s589_s7, 4294967168  ;;  %s599_s17 = scalar_lea.sflag [#allocation5], %s588_s28 }
  0xe3   : > { %965 = dma.done.wait (%p820_p1), %s599_s17, 128  }
  0xe4   : > { %967 = vsyncadd (%p820_p1), %s599_s17, 4294967168  ;;  %s22_s23 = sadd.s32 1, %s990_s23   ;;  %s1269_s18 = smov %s974_s19 }
  0xe5   : > { %p19_p2 = scmp.ge.s32.totalorder %s22_s23, 4   ;;  %s1270_s19 = smov %s978_s20 }
  0xe6   : > { %s1271_s20 = smov %s1078_s6  ;;  %s1272_s21 = smov %s986_s22 }
  0xe7   : > { %s1273_s22 = smov %s1275_s26  ;;  %21 = sbr.rel (!%p19_p2) target bundleno = 8 (0x8), region = 96 }
  0xec   :  { %616 = vsyncpa [#allocation3], 1 }
  0xed   :  { %618 = vsyncpa [#allocation3 + $0x1], 1 }
  0xee   :  { %619 = vsyncpa [#allocation5], 1 }
  0xef   :  { %621 = vsyncpa [#allocation5 + $0x1], 1 }

</bundles_post_ra>
